<compile_context>
chip_gen: v7x
topology: tpu7x:2x2x1
jax: 0.10.0
libtpu: 0.0.40
codegen_flags: <defaults>
</compile_context>

<pallas_src>
import functools
import math

import jax
import jax.numpy as jnp
import numpy as np
from jax import lax
from jax.experimental import pallas as pl
from jax.experimental.pallas import tpu as pltpu

_COS_M = math.cos(0.1)
_SIN_M = math.sin(0.1)

# Comfortably under v7x's 64 MiB physical VMEM, well above the 16/32 MiB
# default scoped limits on v5e / v6e-v7x.
_VMEM_LIMIT_BYTES = 56 * 1024 * 1024


def _round_up(x, m):
    return (x + m - 1) // m * m


def _pick_tile(p):
    # Largest lane-dense tile (multiple of 128, <= 512) that divides P.
    for t in (512, 384, 256, 128):
        if p % t == 0:
            return t
    return 128


def _mosaic_params(dimension_semantics):
    return pltpu.CompilerParams(
        dimension_semantics=dimension_semantics,
        vmem_limit_bytes=_VMEM_LIMIT_BYTES)


def _stats_kernel(c_real, feat_ref, w_ref, bottom_ref, s_ref):
    """Pass 1: bottom[r] = sum_c exp(logits[r,c]); s[r] = ||W_r||*||x_r||."""
    i = pl.program_id(0)          # row tile (feature rows / stats index)
    k = pl.program_id(1)          # class-column tile (reduction axis)
    tk = w_ref.shape[1]

    # bf16 x bf16 -> f32 accumulate on the MXU.
    logits = jnp.dot(feat_ref[...], w_ref[...],
                     preferred_element_type=jnp.float32)             # (T, T)
    exp_l = jnp.exp(logits)

    # Row-sum of exp over the REAL class columns of this tile, landed directly
    # in lane (row-vector) layout via a masked-ones MXU contraction, so the
    # zero-padded class columns (exp(0) == 1) never enter the sum.
    col_ids = k * tk + lax.broadcasted_iota(jnp.int32, (8, tk), 1)
    mask = (col_ids < c_real).astype(jnp.float32)                    # (8, T)
    partial = lax.dot_general(
        mask, exp_l, dimension_numbers=(((1,), (1,)), ((), ())),
        preferred_element_type=jnp.float32)[0:1, :]                  # (1, T)

    @pl.when(k == 0)
    def _():
        bottom_ref[...] = jnp.zeros_like(bottom_ref)

    bottom_ref[...] += partial

    # s[r] = ||W_r|| * ||x_r||: both factors share index r, so compute them at
    # the reduction step where the class tile lines up with the row tile
    # (k == i).  w_norm is a sublane reduce; ||x_r||^2 lands in lane layout via
    # a ones-row MXU contraction over the feature dim (negligible MXU cost).
    @pl.when(k == i)
    def _():
        w32 = w_ref[...].astype(jnp.float32)                         # (Dp, T)
        w_norm = jnp.sqrt(jnp.sum(w32 * w32, axis=0, keepdims=True)) # (1, T)
        f32 = feat_ref[...].astype(jnp.float32)                      # (T, Dp)
        ones = jnp.ones((8, f32.shape[1]), jnp.float32)
        x_sq = lax.dot_general(
            ones, f32 * f32, dimension_numbers=(((1,), (1,)), ((), ())),
            preferred_element_type=jnp.float32)[0:1, :]              # (1, T)
        s_ref[...] = w_norm * jnp.sqrt(x_sq)


def _output_kernel(feat_ref, w_ref, s_ref, bottom_ref, out_ref):
    """Pass 2: one lane-dense (T, T) output tile."""
    logits = jnp.dot(feat_ref[...], w_ref[...],
                     preferred_element_type=jnp.float32)             # (tm, tn)
    s = s_ref[...]                                                   # (1, tn)
    bottom = bottom_ref[...]                                         # (1, tn)

    exp_l = jnp.exp(logits)                                          # == _top
    # s*cos(a + m) = logits*cos(m) - sqrt(s^2 - logits^2)*sin(m).
    # The clamp at 0 removes the rounding-induced |cosa| > 1 NaN hazard
    # (torch.acos domain edge); no cosa/sina temporaries, no 1/s needed.
    s_sin_a = jnp.sqrt(jnp.maximum(s * s - logits * logits, 0.0))
    top = jnp.exp(logits * _COS_M - s_sin_a * _SIN_M)

    denom = bottom - exp_l + top
    # EUP approx reciprocal (~2^-12 rel err); swap to `top / denom` for
    # bit-tight parity requirements.
    out_ref[...] = (top * pl.reciprocal(denom, approx=True)).astype(out_ref.dtype)


def arc_loss(feature, W):
    N, D = feature.shape
    D2, C = W.shape
    assert D == D2
    assert N == C, "torch module's 1-D broadcasting requires batch == cls_dim"

    P = _round_up(C, 128)
    Dp = _round_up(D, 128)
    T = _pick_tile(P)
    nt = P // T
    # TODO(synk): tile the contraction (D) axis as well for very large feature_dim.

    # bf16 MXU operands (all accumulation / elementwise math stays f32 in the
    # kernels).  Pad to lane-dense multiples of 128 only when actually needed;
    # zero padding is exact for the norms and matmuls.
    feat_p = feature.astype(jnp.bfloat16)
    w_p = W.astype(jnp.bfloat16)
    if (P, Dp) != (N, D):
        feat_p = jnp.pad(feat_p, ((0, P - N), (0, Dp - D)))
        w_p = jnp.pad(w_p, ((0, Dp - D), (0, P - C)))

    # Pass 1: per-index stats bottom[r] and s[r] as lane rows (1, P).
    bottom, s = pl.pallas_call(
        functools.partial(_stats_kernel, C),
        out_shape=(jax.ShapeDtypeStruct((1, P), jnp.float32),
                   jax.ShapeDtypeStruct((1, P), jnp.float32)),
        grid_spec=pltpu.PrefetchScalarGridSpec(
            num_scalar_prefetch=0,
            grid=(nt, nt),
            in_specs=[
                pl.BlockSpec((T, Dp), lambda i, k: (i, 0)),
                pl.BlockSpec((Dp, T), lambda i, k: (0, k)),
            ],
            out_specs=[
                pl.BlockSpec((1, T), lambda i, k: (0, i)),
                pl.BlockSpec((1, T), lambda i, k: (0, i)),
            ]),
        compiler_params=_mosaic_params(("parallel", "arbitrary")),
        cost_estimate=pl.CostEstimate(
            flops=2 * P * P * Dp,
            transcendentals=P * P,
            bytes_accessed=(1 + nt) * P * Dp * 2 + 2 * P * 4),
    )(feat_p, w_p)

    # Pass 2: output tiles.  Both axes independent -> 'parallel' so v7x shards
    # them across its two TensorCores (near-no-op on v5e/v6e).
    out_p = pl.pallas_call(
        _output_kernel,
        out_shape=jax.ShapeDtypeStruct((P, P), jnp.float32),
        grid_spec=pltpu.PrefetchScalarGridSpec(
            num_scalar_prefetch=0,
            grid=(nt, nt),
            in_specs=[
                pl.BlockSpec((T, Dp), lambda i, j: (i, 0)),
                pl.BlockSpec((Dp, T), lambda i, j: (0, j)),
                pl.BlockSpec((1, T), lambda i, j: (0, j)),
                pl.BlockSpec((1, T), lambda i, j: (0, j)),
            ],
            out_specs=pl.BlockSpec((T, T), lambda i, j: (i, j))),
        compiler_params=_mosaic_params(("parallel", "parallel")),
        cost_estimate=pl.CostEstimate(
            flops=2 * P * P * Dp,
            transcendentals=2 * P * P,
            bytes_accessed=(1 + nt) * P * Dp * 2 + 2 * nt * P * 4 + P * P * 4),
    )(feat_p, w_p, s, bottom)

    if (P, P) != (N, C):
        out_p = out_p[:N, :C]
    return out_p


if __name__ == "__main__":
    feature_dim, cls_dim = 32, 8
    batch = cls_dim  # the module's 1-D broadcasting only works when batch == cls_dim

    key = jax.random.PRNGKey(0)
    k1, k2 = jax.random.split(key)
    feature = jax.random.normal(k1, (batch, feature_dim), jnp.float32)
    # Normalize feature rows (keeps the demo comfortably NaN-free).
    feature = feature / jnp.linalg.norm(feature, axis=1, keepdims=True)
    W = 0.25 * jax.random.normal(k2, (feature_dim, cls_dim), jnp.float32)

    out = arc_loss(feature, W)
    jax.block_until_ready(out)

    # Plain-JAX reference mirroring the torch forward exactly (f32 inputs).
    _W = jnp.linalg.norm(W, axis=0)
    _X = jnp.linalg.norm(feature, axis=1)
    o = feature @ W
    cosa = o / (_W * _X)
    a = jnp.arccos(cosa)
    top = jnp.exp(_W * _X * jnp.cos(a + 0.1))
    _top = jnp.exp(_W * _X * jnp.cos(a))
    bottom = jnp.sum(jnp.exp(o), axis=1)
    ref = top / (bottom - _top + top)

    assert out.shape == ref.shape == (batch, cls_dim)
    np.testing.assert_allclose(np.asarray(out), np.asarray(ref), rtol=2e-2, atol=2e-2)
    print("KERNEL_OK")
</pallas_src>

<mosaic_0001>
module attributes {stable_mosaic.version = 11 : i64} {
  func.func @_stats_kernel(%arg0: i32, %arg1: i32, %arg2: memref<128x128xbf16, #tpu.memory_space<vmem>>, %arg3: memref<128x128xbf16, #tpu.memory_space<vmem>>, %arg4: memref<1x128xf32, #tpu.memory_space<vmem>>, %arg5: memref<1x128xf32, #tpu.memory_space<vmem>>) attributes {dimension_semantics = [#tpu.dimension_semantics<parallel>, #tpu.dimension_semantics<arbitrary>], iteration_bounds = array<i64: 1, 1>, scalar_prefetch = 0 : i64, scratch_operands = 0 : i64, tpu.core_type = #tpu.core_type<tc>, window_params = [{transform_indices = @transform_0, window_bounds = array<i64: 128, 128>}, {transform_indices = @transform_1, window_bounds = array<i64: 128, 128>}, {transform_indices = @transform_2, window_bounds = array<i64: 1, 128>}, {transform_indices = @transform_3, window_bounds = array<i64: 1, 128>}]} {
    %c0 = arith.constant 0 : index
    %c0_0 = arith.constant 0 : index
    %0 = vector.load %arg2[%c0, %c0_0] : memref<128x128xbf16, #tpu.memory_space<vmem>>, vector<128x128xbf16>
    %c0_1 = arith.constant 0 : index
    %c0_2 = arith.constant 0 : index
    %1 = vector.load %arg3[%c0_1, %c0_2] : memref<128x128xbf16, #tpu.memory_space<vmem>>, vector<128x128xbf16>
    %cst = arith.constant dense<0.000000e+00> : vector<128x128xf32>
    %2 = tpu.matmul %0, %1, %cst {dimension_numbers = #tpu.dot_dimension_numbers<[1], [0], [0], [1], [0, 0, 1, 1], [], []>} : vector<128x128xbf16>, vector<128x128xbf16>, vector<128x128xf32> -> vector<128x128xf32>
    %3 = math.exp %2 : vector<128x128xf32>
    %c128_i32 = arith.constant 128 : i32
    %4 = arith.muli %arg1, %c128_i32 : i32
    %5 = tpu.iota {dimensions = array<i32: 1>} : vector<8x128xi32>
    %6 = vector.broadcast %4 : i32 to vector<8x128xi32>
    %7 = arith.addi %6, %5 : vector<8x128xi32>
    %c8_i32 = arith.constant 8 : i32
    %8 = vector.broadcast %c8_i32 : i32 to vector<8x128xi32>
    %9 = arith.cmpi slt, %7, %8 : vector<8x128xi32>
    %10 = arith.extui %9 : vector<8x128xi1> to vector<8x128xi32>
    %11 = arith.sitofp %10 : vector<8x128xi32> to vector<8x128xf32>
    %cst_3 = arith.constant dense<0.000000e+00> : vector<8x128xf32>
    %12 = tpu.matmul %11, %3, %cst_3 {dimension_numbers = #tpu.dot_dimension_numbers<[1], [1], [0], [0], [0, 0, 1, 0], [], []>} : vector<8x128xf32>, vector<128x128xf32>, vector<8x128xf32> -> vector<8x128xf32>
    %13 = vector.extract_strided_slice %12 {offsets = [0, 0], sizes = [1, 128], strides = [1, 1]} : vector<8x128xf32> to vector<1x128xf32>
    %c0_i32 = arith.constant 0 : i32
    %14 = arith.cmpi eq, %arg1, %c0_i32 : i32
    %15 = arith.extui %14 : i1 to i32
    %c0_i32_4 = arith.constant 0 : i32
    %16 = arith.cmpi ne, %15, %c0_i32_4 : i32
    scf.if %16 {
      %cst_10 = arith.constant 0.000000e+00 : f32
      %23 = vector.broadcast %cst_10 : f32 to vector<1x128xf32>
      %c0_11 = arith.constant 0 : index
      %c0_12 = arith.constant 0 : index
      %24 = vector.load %arg4[%c0_11, %c0_12] : memref<1x128xf32, #tpu.memory_space<vmem>>, vector<1x128xf32>
      tpu.vector_store %arg4[%c0_11, %c0_12], %23 {strides = array<i32>} : memref<1x128xf32, #tpu.memory_space<vmem>>, vector<1x128xf32>,
    } else {
    }
    %c0_5 = arith.constant 0 : index
    %c0_6 = arith.constant 0 : index
    %17 = vector.load %arg4[%c0_5, %c0_6] : memref<1x128xf32, #tpu.memory_space<vmem>>, vector<1x128xf32>
    %18 = arith.addf %17, %13 : vector<1x128xf32>
    %c0_7 = arith.constant 0 : index
    %c0_8 = arith.constant 0 : index
    %19 = vector.load %arg4[%c0_7, %c0_8] : memref<1x128xf32, #tpu.memory_space<vmem>>, vector<1x128xf32>
    tpu.vector_store %arg4[%c0_7, %c0_8], %18 {strides = array<i32>} : memref<1x128xf32, #tpu.memory_space<vmem>>, vector<1x128xf32>,
    %20 = arith.cmpi eq, %arg1, %arg0 : i32
    %21 = arith.extui %20 : i1 to i32
    %c0_i32_9 = arith.constant 0 : i32
    %22 = arith.cmpi ne, %21, %c0_i32_9 : i32
    scf.if %22 {
      %c0_10 = arith.constant 0 : index
      %c0_11 = arith.constant 0 : index
      %23 = vector.load %arg3[%c0_10, %c0_11] : memref<128x128xbf16, #tpu.memory_space<vmem>>, vector<128x128xbf16>
      %24 = arith.extf %23 : vector<128x128xbf16> to vector<128x128xf32>
      %25 = arith.mulf %24, %24 : vector<128x128xf32>
      %cst_12 = arith.constant dense<0.000000e+00> : vector<128xf32>
      %26 = vector.multi_reduction <add>, %25, %cst_12 [0] : vector<128x128xf32> to vector<128xf32>
      %27 = vector.shape_cast %26 : vector<128xf32> to vector<1x128xf32>
      %28 = math.sqrt %27 : vector<1x128xf32>
      %c0_13 = arith.constant 0 : index
      %c0_14 = arith.constant 0 : index
      %29 = vector.load %arg2[%c0_13, %c0_14] : memref<128x128xbf16, #tpu.memory_space<vmem>>, vector<128x128xbf16>
      %30 = arith.extf %29 : vector<128x128xbf16> to vector<128x128xf32>
      %cst_15 = arith.constant 1.000000e+00 : f32
      %31 = vector.broadcast %cst_15 : f32 to vector<8x128xf32>
      %32 = arith.mulf %30, %30 : vector<128x128xf32>
      %cst_16 = arith.constant dense<0.000000e+00> : vector<8x128xf32>
      %33 = tpu.matmul %31, %32, %cst_16 {dimension_numbers = #tpu.dot_dimension_numbers<[1], [1], [0], [0], [0, 0, 1, 0], [], []>} : vector<8x128xf32>, vector<128x128xf32>, vector<8x128xf32> -> vector<8x128xf32>
      %34 = vector.extract_strided_slice %33 {offsets = [0, 0], sizes = [1, 128], strides = [1, 1]} : vector<8x128xf32> to vector<1x128xf32>
      %35 = math.sqrt %34 : vector<1x128xf32>
      %36 = arith.mulf %28, %35 : vector<1x128xf32>
      %c0_17 = arith.constant 0 : index
      %c0_18 = arith.constant 0 : index
      %37 = vector.load %arg5[%c0_17, %c0_18] : memref<1x128xf32, #tpu.memory_space<vmem>>, vector<1x128xf32>
      tpu.vector_store %arg5[%c0_17, %c0_18], %36 {strides = array<i32>} : memref<1x128xf32, #tpu.memory_space<vmem>>, vector<1x128xf32>,
    } else {
    }
    return
  }
  func.func @transform_0(%arg0: i32, %arg1: i32) -> (i32, i32) {
    %c0_i32 = arith.constant 0 : i32
    %c0_i32_0 = arith.constant 0 : i32
    return %arg0, %c0_i32 : i32, i32
  }
  func.func @transform_1(%arg0: i32, %arg1: i32) -> (i32, i32) {
    %c0_i32 = arith.constant 0 : i32
    %c0_i32_0 = arith.constant 0 : i32
    return %c0_i32, %arg1 : i32, i32
  }
  func.func @transform_2(%arg0: i32, %arg1: i32) -> (i32, i32) {
    %c0_i32 = arith.constant 0 : i32
    %c0_i32_0 = arith.constant 0 : i32
    return %c0_i32, %arg0 : i32, i32
  }
  func.func @transform_3(%arg0: i32, %arg1: i32) -> (i32, i32) {
    %c0_i32 = arith.constant 0 : i32
    %c0_i32_0 = arith.constant 0 : i32
    return %c0_i32, %arg0 : i32, i32
  }
}

</mosaic_0001>

<bundles_post_ra>
// kernel: tpu_custom_call.1
= control target key start
LH: loop header
LB: loop body
LE: loop exit
PB: predicated region body
PF: predicated region fallthrough
CT: control target
= control target key end

     0   :  { %9 = vsyncpa [#allocation3], 0  ;;  %s1174_s0 = inlined_call_operand.hbm [shape: bf16[128,128], index: 0, kind: input, shape index: {}]   ;;  %s1175_s1 = inlined_call_operand.hbm [shape: bf16[128,128], index: 1, kind: input, shape index: {}]   ;;  %s1176_s2 = inlined_call_operand.hbm [shape: f32[1,128], index: 2, kind: output, shape index: {0}]   ;;  %s1177_s3 = inlined_call_operand.hbm [shape: f32[1,128], index: 3, kind: output, shape index: {1}]  }
   0x1   :  { %10 = vsyncpa [#allocation6], 0 }
   0x2   :  { %11 = vsyncpa [#allocation4], 0 }
   0x3   :  { %12 = vsyncpa [#allocation9], 0  ;;  %s1078_s12 = smov [#allocation2]   ;;  %s982_s16 = scalar_lea.hbm %s1174_s0, 1024 }
   0x4   :  { %s18_s13 = sshll.u32 %s1078_s12, 4  ;;  %p983_p0 = scmp.ne.s32.totalorder %s1174_s0, %s982_s16  ;;  %s19_s13 = int_to_ptr.vmem [resolvable:$true] %s18_s13 }
   0x5   :  { %p986_p1 = scmp.lt.u32.totalorder %s982_s16, %s1174_s0 }
   0x7   :  { %p988_p2 = pnand %p986_p1, %p983_p0 }
   0x9   :  { %991 = shalt.err (!%p988_p2)
}
   0xa   :  { %s992_s21 = scalar_lea.vmem %s19_s13, 1024  ;;  %p997_p4 = scmp.lt.s32.totalorder %s19_s13, %s19_s13 }
   0xb   :  { %p993_p3 = scmp.ne.s32.totalorder %s19_s13, %s992_s21  ;;  %p998_p5 = scmp.lt.s32.totalorder %s992_s21, %s992_s21 }
   0xd   :  { %p999_p6 = por %p998_p5, %p997_p4 }
   0xf   :  { %p1000_p7 = pnand %p999_p6, %p993_p3 }
  0x11   :  { %1003 = shalt.err (!%p1000_p7)
}
  0x12   :  { %s1079_s22 = smov 64   ;;  %s1080_s23 = smov 4  }
  0x13   :  { %24 = dma.hbm_to_vmem [thread:$0]  %s1174_s0, 1024, %s19_s13, [#allocation3], %s1079_s22, %s1079_s22, %s1080_s23  }
  0x14   :  { %s1081_s26 = smov [#allocation5]   ;;  %s1004_s30 = scalar_lea.hbm %s1175_s1, 1024 }
  0x15   :  { %s30_s27 = sshll.u32 %s1081_s26, 4  ;;  %p1005_p8 = scmp.ne.s32.totalorder %s1175_s1, %s1004_s30  ;;  %s31_s27 = int_to_ptr.vmem [resolvable:$true] %s30_s27 }
  0x16   :  { %p1008_p9 = scmp.lt.u32.totalorder %s1004_s30, %s1175_s1 }
  0x18   :  { %p1010_p10 = pnand %p1008_p9, %p1005_p8 }
  0x1a   :  { %1013 = shalt.err (!%p1010_p10)
}
  0x1b   :  { %s1014_s8 = scalar_lea.vmem %s31_s27, 1024  ;;  %p1019_p12 = scmp.lt.s32.totalorder %s31_s27, %s31_s27 }
  0x1c   :  { %p1015_p11 = scmp.ne.s32.totalorder %s31_s27, %s1014_s8  ;;  %p1020_p13 = scmp.lt.s32.totalorder %s1014_s8, %s1014_s8 }
  0x1e   :  { %p1021_p0 = por %p1020_p13, %p1019_p12 }
  0x20   :  { %p1022_p1 = pnand %p1021_p0, %p1015_p11 }
  0x22   :  { %1025 = shalt.err (!%p1022_p1)
}
  0x23   :  { %36 = dma.hbm_to_vmem [thread:$0]  %s1175_s1, 1024, %s31_s27, [#allocation6], %s1079_s22, %s1079_s22, %s1080_s23  }
  0x24   :  { %1070 = dma.done.wait [#allocation3], 1024  }
  0x25   :  { %1071 = vsyncadd [#allocation3], 4294966272 }
  0x26   :  { %1072 = dma.done.wait [#allocation6], 1024  }
  0x27   :  { %1073 = vsyncadd [#allocation6], 4294966272  ;;  %v1082_v0 = vmov 0.0|0.0   ;;  %v930_v1 = vld [vmem:[#allocation5] sm:$0xff]   ;;  %v931_v2 = vld [vmem:[#allocation5 + $0x8] sm:$0xff]   ;;  %vm1084_vm0 = vmmov 0  }
  0x28   :  { %872 = vmatprep.subr.bf16.mxu1 %v1082_v0  ;;  %770 = vmatprep.subr.bf16.mxu0 %v930_v1  ;;  %v932_v3 = vld [vmem:[#allocation5 + $0x10] sm:$0xff]   ;;  %v933_v4 = vld [vmem:[#allocation5 + $0x18] sm:$0xff]   ;;  %v938_v5 = vld [vmem:[#allocation2] sm:$0xff]   ;;  %s1086_s1 = smov [#allocation8]  }
  0x29   :  { %771 = vmatpush3.bf16.msra.mxu0 %v930_v1  ;;  %786 = vmatprep.mubr.bf16.mxu0 %v938_v5  ;;  %v934_v6 = vld [vmem:[#allocation5 + $0x20] sm:$0xff]   ;;  %v935_v7 = vld [vmem:[#allocation5 + $0x28] sm:$0xff]   ;;  %v936_v8 = vld [vmem:[#allocation5 + $0x30] sm:$0xff]   ;;  %s610_s10 = sshll.u32 %s1086_s1, 4  ;;  %s611_s10 = int_to_ptr.vmem [resolvable:$true] %s610_s10 }
  0x2a   :  { %772 = vmatprep.subr.bf16.mxu0 %v931_v2  ;;  %v937_v9 = vld [vmem:[#allocation5 + $0x38] sm:$0xff]   ;;  %v675_v10 = vld [vmem:[#allocation2] sm:$0xff]   ;;  %v939_v13 = vld [vmem:[#allocation2 + $0x8] sm:$0xff]   ;;  %s1026_s11 = scalar_lea.vmem %s611_s10, 16  ;;  %s1030_s12 = scalar_lea.vmem %s611_s10, 32 }
  0x2b   :  { %v676_v11 = vunpack.c.l.bf16 %v675_v10  ;;  %v677_v12 = vunpack.c.h.bf16 %v675_v10  ;;  %v940_v14 = vld [vmem:[#allocation2 + $0x10] sm:$0xff]   ;;  %v713_v17 = vld [vmem:[#allocation2 + $0x8] sm:$0xff]   ;;  %v941_v21 = vld [vmem:[#allocation2 + $0x18] sm:$0xff]   ;;  %p1027_p2 = scmp.ne.s32.totalorder %s611_s10, %s1026_s11  ;;  %p1031_p3 = scmp.lt.s32.totalorder %s611_s10, %s611_s10 }
  0x2c   :  { %v680_v19 = vunpack.c.l.bf16 %v713_v17  ;;  %v681_v20 = vunpack.c.h.bf16 %v713_v17  ;;  %v942_v22 = vld [vmem:[#allocation2 + $0x20] sm:$0xff]   ;;  %v943_v26 = vld [vmem:[#allocation2 + $0x28] sm:$0xff]   ;;  %v944_v27 = vld [vmem:[#allocation2 + $0x30] sm:$0xff]   ;;  %p1032_p4 = scmp.lt.s32.totalorder %s1030_s12, %s1026_s11 }
  0x2d   :  { %773 = vmatpush3.bf16.msra.mxu0 %v931_v2  ;;  %v499_v15 = vmul.f32 %v676_v11, %v676_v11  ;;  %v500_v16 = vmul.f32 %v677_v12, %v677_v12  ;;  %v945_v28 = vld [vmem:[#allocation2 + $0x38] sm:$0xff]   ;;  %v714_v29 = vld [vmem:[#allocation2 + $0x10] sm:$0xff]   ;;  %v716_v41 = vld [vmem:[#allocation2 + $0x20] sm:$0xff]   ;;  %v1083_v2 = vmov 0.0  }
  0x2e   :  { %774 = vmatprep.subr.bf16.mxu0 %v932_v3  ;;  %v501_v23 = vmul.f32 %v680_v19, %v680_v19  ;;  %v502_v24 = vmul.f32 %v681_v20, %v681_v20  ;;  %v684_v30 = vunpack.c.l.bf16 %v714_v29  ;;  %v685_v31 = vunpack.c.h.bf16 %v714_v29  ;;  %v715_v35 = vld [vmem:[#allocation2 + $0x18] sm:$0xff]   ;;  %v717_v47 = vld [vmem:[#allocation2 + $0x28] sm:$0xff]   ;;  %v718_v53 = vld [vmem:[#allocation2 + $0x30] sm:$0xff]   ;;  %383 = vst [vmem:[#allocation7] sm:$0x1] %v1083_v2  ;;  %834 = vmatprep.mubr.msk.f32.mxu1 %vm1084_vm0, %v1083_v2  ;;  %p1033_p5 = por %p1032_p4, %p1031_p3 }
  0x2f   :  { %v897_v18 = vpack.c.bf16 %v500_v16, %v499_v15  ;;  %v688_v36 = vunpack.c.l.bf16 %v715_v35  ;;  %v689_v37 = vunpack.c.h.bf16 %v715_v35  ;;  %v692_v42 = vunpack.c.l.bf16 %v716_v41  ;;  %v719_v59 = vld [vmem:[#allocation2 + $0x38] sm:$0xff]  }
  0x30   :  { %v900_v25 = vpack.c.bf16 %v502_v24, %v501_v23  ;;  %v503_v32 = vmul.f32 %v684_v30, %v684_v30  ;;  %v504_v33 = vmul.f32 %v685_v31, %v685_v31  ;;  %v693_v43 = vunpack.c.h.bf16 %v716_v41  ;;  %p1034_p6 = pnand %p1033_p5, %p1027_p2 }
  0x31   :  { %775 = vmatpush3.bf16.msra.mxu0 %v932_v3  ;;  %v505_v38 = vmul.f32 %v688_v36, %v688_v36  ;;  %v506_v39 = vmul.f32 %v689_v37, %v689_v37  ;;  %v507_v44 = vmul.f32 %v692_v42, %v692_v42  ;;  %v696_v48 = vunpack.c.l.bf16 %v717_v47 }
  0x32   :  { %776 = vmatprep.subr.bf16.mxu0 %v933_v4  ;;  %v903_v34 = vpack.c.bf16 %v504_v33, %v503_v32  ;;  %v508_v45 = vmul.f32 %v693_v43, %v693_v43  ;;  %v697_v49 = vunpack.c.h.bf16 %v717_v47  ;;  %v700_v54 = vunpack.c.l.bf16 %v718_v53 }
  0x33   :  { %v906_v40 = vpack.c.bf16 %v506_v39, %v505_v38  ;;  %v509_v50 = vmul.f32 %v696_v48, %v696_v48  ;;  %v701_v55 = vunpack.c.h.bf16 %v718_v53  ;;  %v704_v60 = vunpack.c.l.bf16 %v719_v59 }
  0x34   :  { %v909_v46 = vpack.c.bf16 %v508_v45, %v507_v44  ;;  %v510_v51 = vmul.f32 %v697_v49, %v697_v49  ;;  %v511_v56 = vmul.f32 %v700_v54, %v700_v54  ;;  %v705_v61 = vunpack.c.h.bf16 %v719_v59 }
  0x35   :  { %777 = vmatpush3.bf16.msra.mxu0 %v933_v4  ;;  %v512_v57 = vmul.f32 %v701_v55, %v701_v55  ;;  %v513_v62 = vmul.f32 %v704_v60, %v704_v60  ;;  %v1085_v3 = vmov 1.0   ;;  %v302_v60 = vlaneseq }
  0x36   :  { %778 = vmatprep.subr.bf16.mxu0 %v934_v6  ;;  %v912_v52 = vpack.c.bf16 %v510_v51, %v509_v50  ;;  %v514_v63 = vmul.f32 %v705_v61, %v705_v61 }
  0x37   :  { %v915_v58 = vpack.c.bf16 %v512_v57, %v511_v56  ;;  %v303_v61 = vand.u32 127, %v302_v60 }
  0x38   :  { %v918_v1 = vpack.c.bf16 %v514_v63, %v513_v62  ;;  %v643_v62 = vld [vmem:[#allocation5] sm:$0xff]  }
  0x39   :  { %779 = vmatpush3.bf16.msra.mxu0 %v934_v6  ;;  %vm306_vm1 = vcmp.lt.s32.totalorder %v303_v61, 8  ;;  %v644_v63 = vunpack.c.l.bf16 %v643_v62 }
  0x3a   :  { %780 = vmatprep.subr.bf16.mxu0 %v935_v7 }
  0x3d   :  { %781 = vmatpush3.bf16.msra.mxu0 %v935_v7 }
  0x3e   :  { %782 = vmatprep.subr.bf16.mxu0 %v936_v8 }
  0x41   :  { %783 = vmatpush3.bf16.msra.mxu0 %v936_v8 }
  0x42   :  { %784 = vmatprep.subr.bf16.mxu0 %v937_v9 }
  0x45   :  { %785 = vmatpush3.bf16.msra.mxu0 %v937_v9 }
  0x46   :  { %896 = vmatprep.subr.bf16.mxu0 %v1082_v0 }
  0x48   :  { %787 = vmatmul.mubr.bf16.vlgmr.msra.gmra.mrb[0].mxu0 %v939_v13 }
  0x49   :  { %790 = vmatprep.mubr.bf16.mxu0 %v940_v14 }
  0x4e   :  { %898 = vmatpush3.bf16.xpose.msra.mxu0 %v897_v18 }
  0x4f   :  { %899 = vmatprep.subr.bf16.mxu0 %v1082_v0 }
  0x50   :  { %791 = vmatmul.mubr.bf16.gmra.mrb[4].mxu0 %v941_v21 }
  0x51   :  { %794 = vmatprep.mubr.bf16.mxu0 %v942_v22 }
  0x56   :  { %901 = vmatpush3.bf16.xpose.msra.mxu0 %v900_v25 }
  0x57   :  { %902 = vmatprep.subr.bf16.mxu0 %v1082_v0 }
  0x58   :  { %795 = vmatmul.mubr.bf16.gmra.mrb[8].mxu0 %v943_v26 }
  0x59   :  { %798 = vmatprep.mubr.bf16.mxu0 %v944_v27 }
  0x5e   :  { %904 = vmatpush3.bf16.xpose.msra.mxu0 %v903_v34 }
  0x5f   :  { %905 = vmatprep.subr.bf16.mxu0 %v1082_v0 }
  0x60   :  { %799 = vmatmul.mubr.bf16.gmra.mrb[12].mxu0 %v945_v28 }
  0x61   :  { %869 = vmatprep.mubr.msk.f32.mxu0 %vm1084_vm0, %v1083_v2  ;;  %v706_v2 = vld [vmem:[#allocation5 + $0x8] sm:$0xff]  }
  0x66   :  { %907 = vmatpush3.bf16.xpose.msra.mxu0 %v906_v40 }
  0x67   :  { %908 = vmatprep.subr.bf16.mxu0 %v1082_v0 }
  0x6e   :  { %910 = vmatpush3.bf16.xpose.msra.mxu0 %v909_v46 }
  0x6f   :  { %911 = vmatprep.subr.bf16.mxu0 %v1082_v0 }
  0x76   :  { %913 = vmatpush3.bf16.xpose.msra.mxu0 %v912_v52 }
  0x77   :  { %914 = vmatprep.subr.bf16.mxu0 %v1082_v0 }
  0x7e   :  { %916 = vmatpush3.bf16.xpose.msra.mxu0 %v915_v58 }
  0x7f   :  { %917 = vmatprep.subr.bf16.mxu0 %v1082_v0 }
  0x86   :  { %919 = vmatpush3.bf16.xpose.msra.mxu0 %v918_v1  ;;  %v645_v1 = vunpack.c.h.bf16 %v643_v62 }
  0x8d   :  { %870 = vmatmul.mubr.f32.vlgmr.msra.gmra.mrb[16].mxu0 %v1085_v3 }
 0x11b   :  { %v788_v4 = vpop.f32.mrb[0].mxu0 }
 0x11c   :  { %v273_v5 = vmul.f32 1.442695, %v788_v4  ;;  %v206_v6 = vpop.f32.mrb[1].mxu0  ;;  %v648_v4 = vunpack.c.l.bf16 %v706_v2 }
 0x11d   :  { %v269_v7 = vmul.f32 1.442695, %v206_v6  ;;  %v789_v8 = vpop.f32.mrb[2].mxu0  ;;  %v424_v6 = vmul.f32 %v645_v1, %v645_v1 }
 0x11e   :  { %946 = vpow2.f32 %v273_v5  ;;  %v275_v9 = vmul.f32 1.442695, %v789_v8  ;;  %v209_v10 = vpop.f32.mrb[3].mxu0  ;;  %v423_v5 = vmul.f32 %v644_v63, %v644_v63  ;;  %v425_v8 = vmul.f32 %v648_v4, %v648_v4 }
 0x11f   :  { %948 = vpow2.f32 %v269_v7  ;;  %v271_v11 = vmul.f32 1.442695, %v209_v10  ;;  %v649_v7 = vunpack.c.h.bf16 %v706_v2  ;;  %v707_v10 = vld [vmem:[#allocation5 + $0x10] sm:$0xff]  }
 0x120   :  { %950 = vpow2.f32 %v275_v9  ;;  %v439_v9 = vadd.f32 %v424_v6, %v423_v5 }
 0x121   :  { %952 = vpow2.f32 %v271_v11  ;;  %v652_v11 = vunpack.c.l.bf16 %v707_v10 }
 0x123   :  { %v792_v12 = vpop.f32.mrb[4].mxu0 }
 0x124   :  { %v281_v13 = vmul.f32 1.442695, %v792_v12  ;;  %v222_v14 = vpop.f32.mrb[5].mxu0  ;;  %v426_v12 = vmul.f32 %v649_v7, %v649_v7 }
 0x125   :  { %v277_v15 = vmul.f32 1.442695, %v222_v14  ;;  %v793_v16 = vpop.f32.mrb[6].mxu0  ;;  %v427_v14 = vmul.f32 %v652_v11, %v652_v11 }
 0x126   :  { %954 = vpow2.f32 %v281_v13  ;;  %v283_v17 = vmul.f32 1.442695, %v793_v16  ;;  %v225_v18 = vpop.f32.mrb[7].mxu0  ;;  %v653_v13 = vunpack.c.h.bf16 %v707_v10  ;;  %v708_v16 = vld [vmem:[#allocation5 + $0x18] sm:$0xff]  }
 0x127   :  { %956 = vpow2.f32 %v277_v15  ;;  %v279_v19 = vmul.f32 1.442695, %v225_v18 }
 0x128   :  { %v947_v20 = vpop.eup %946  ;;  %958 = vpow2.f32 %v283_v17  ;;  %v656_v17 = vunpack.c.l.bf16 %v708_v16 }
 0x129   :  { %v949_v21 = vpop.eup %948  ;;  %960 = vpow2.f32 %v279_v19  ;;  %v657_v19 = vunpack.c.h.bf16 %v708_v16 }
 0x12a   :  { %v951_v22 = vpop.eup %950 }
 0x12b   :  { %v953_v23 = vpop.eup %952  ;;  %v876_v24 = vpack.c.bf16 %v951_v22, %v947_v20  ;;  %v796_v25 = vpop.f32.mrb[8].mxu0  ;;  %v429_v20 = vmul.f32 %v656_v17, %v656_v17  ;;  %v709_v22 = vld [vmem:[#allocation5 + $0x20] sm:$0xff]  }
 0x12c   :  { %v873_v26 = vpack.c.bf16 %v953_v23, %v949_v21  ;;  %v289_v27 = vmul.f32 1.442695, %v796_v25  ;;  %v238_v28 = vpop.f32.mrb[9].mxu0  ;;  %v660_v23 = vunpack.c.l.bf16 %v709_v22 }
 0x12d   :  { %v285_v29 = vmul.f32 1.442695, %v238_v28  ;;  %v797_v30 = vpop.f32.mrb[10].mxu0 }
 0x12e   :  { %874 = vmatpush3.bf16.xpose.msra.mxu1 %v873_v26  ;;  %962 = vpow2.f32 %v289_v27  ;;  %v291_v31 = vmul.f32 1.442695, %v797_v30  ;;  %v241_v32 = vpop.f32.mrb[11].mxu0  ;;  %v661_v26 = vunpack.c.h.bf16 %v709_v22  ;;  %v431_v27 = vmul.f32 %v660_v23, %v660_v23 }
 0x12f   :  { %875 = vmatprep.subr.bf16.mxu1 %v1082_v0  ;;  %964 = vpow2.f32 %v285_v29  ;;  %v287_v33 = vmul.f32 1.442695, %v241_v32  ;;  %v710_v29 = vld [vmem:[#allocation5 + $0x28] sm:$0xff]  }
 0x130   :  { %v955_v34 = vpop.eup %954  ;;  %966 = vpow2.f32 %v291_v31  ;;  %v664_v30 = vunpack.c.l.bf16 %v710_v29  ;;  %v432_v31 = vmul.f32 %v661_v26, %v661_v26 }
 0x131   :  { %v957_v35 = vpop.eup %956  ;;  %968 = vpow2.f32 %v287_v33  ;;  %v665_v33 = vunpack.c.h.bf16 %v710_v29 }
 0x132   :  { %v959_v36 = vpop.eup %958 }
 0x133   :  { %v961_v37 = vpop.eup %960  ;;  %v882_v38 = vpack.c.bf16 %v959_v36, %v955_v34  ;;  %v800_v39 = vpop.f32.mrb[12].mxu0  ;;  %v433_v34 = vmul.f32 %v664_v30, %v664_v30  ;;  %v711_v36 = vld [vmem:[#allocation5 + $0x30] sm:$0xff]  }
 0x134   :  { %v879_v40 = vpack.c.bf16 %v961_v37, %v957_v35  ;;  %v297_v41 = vmul.f32 1.442695, %v800_v39  ;;  %v254_v42 = vpop.f32.mrb[13].mxu0  ;;  %v668_v37 = vunpack.c.l.bf16 %v711_v36 }
 0x135   :  { %v293_v43 = vmul.f32 1.442695, %v254_v42  ;;  %v801_v44 = vpop.f32.mrb[14].mxu0 }
 0x136   :  { %877 = vmatpush3.bf16.xpose.msra.mxu1 %v876_v24  ;;  %970 = vpow2.f32 %v297_v41  ;;  %v299_v45 = vmul.f32 1.442695, %v801_v44  ;;  %v257_v46 = vpop.f32.mrb[15].mxu0  ;;  %v430_v24 = vmul.f32 %v657_v19, %v657_v19  ;;  %v435_v41 = vmul.f32 %v668_v37, %v668_v37 }
 0x137   :  { %878 = vmatprep.subr.bf16.mxu1 %v1082_v0  ;;  %972 = vpow2.f32 %v293_v43  ;;  %v295_v47 = vmul.f32 1.442695, %v257_v46  ;;  %v712_v43 = vld [vmem:[#allocation5 + $0x38] sm:$0xff]  }
 0x138   :  { %v963_v48 = vpop.eup %962  ;;  %974 = vpow2.f32 %v299_v45  ;;  %v672_v44 = vunpack.c.l.bf16 %v712_v43 }
 0x139   :  { %v965_v49 = vpop.eup %964  ;;  %976 = vpow2.f32 %v295_v47  ;;  %v673_v47 = vunpack.c.h.bf16 %v712_v43 }
 0x13a   :  { %v967_v50 = vpop.eup %966 }
 0x13b   :  { %v969_v51 = vpop.eup %968  ;;  %v888_v52 = vpack.c.bf16 %v967_v50, %v963_v48  ;;  %v437_v48 = vmul.f32 %v672_v44, %v672_v44  ;;  %v438_v50 = vmul.f32 %v673_v47, %v673_v47 }
 0x13c   :  { %v885_v53 = vpack.c.bf16 %v969_v51, %v965_v49 }
 0x13e   :  { %880 = vmatpush3.bf16.xpose.msra.mxu1 %v879_v40  ;;  %v669_v40 = vunpack.c.h.bf16 %v711_v36 }
 0x13f   :  { %881 = vmatprep.subr.bf16.mxu1 %v1082_v0 }
 0x140   :  { %v971_v54 = vpop.eup %970  ;;  %v436_v45 = vmul.f32 %v669_v40, %v669_v40 }
 0x141   :  { %v973_v55 = vpop.eup %972 }
 0x142   :  { %v975_v56 = vpop.eup %974 }
 0x143   :  { %v977_v57 = vpop.eup %976  ;;  %v894_v58 = vpack.c.bf16 %v975_v56, %v971_v54 }
 0x144   :  { %v891_v59 = vpack.c.bf16 %v977_v57, %v973_v55 }
 0x146   :  { %883 = vmatpush3.bf16.xpose.msra.mxu1 %v882_v38  ;;  %v434_v38 = vmul.f32 %v665_v33, %v665_v33 }
 0x147   :  { %884 = vmatprep.subr.bf16.mxu1 %v1082_v0 }
 0x14e   :  { %886 = vmatpush3.bf16.xpose.msra.mxu1 %v885_v53 }
 0x14f   :  { %887 = vmatprep.subr.bf16.mxu1 %v1082_v0 }
 0x156   :  { %889 = vmatpush3.bf16.xpose.msra.mxu1 %v888_v52 }
 0x157   :  { %890 = vmatprep.subr.bf16.mxu1 %v1082_v0 }
 0x15e   :  { %892 = vmatpush3.bf16.xpose.msra.mxu1 %v891_v59 }
 0x15f   :  { %893 = vmatprep.subr.bf16.mxu1 %v1082_v0  ;;  %v440_v0 = vadd.f32 %v439_v9, %v425_v8 }
 0x160   :  { %v581_v59 = vpop.f32.mrb[16].mxu0 }
 0x161   :  { %v441_v15 = vadd.f32 %v440_v0, %v426_v12  ;;  %978 = vrsqrt.f32 %v581_v59  ;;  %v871_v60 = vpop.f32.mrb[17].mxu0  ;;  %vm587_vm3 = vcmp.eq.f32.partialorder %v581_v59, inf  ;;  %vm589_vm5 = vcmp.eq.f32.partialorder %v581_v59, 0.0 }
 0x162   :  { %v590_v5 = vand.u32 2147483648, %v581_v59 }
 0x163   :  { %v442_v18 = vadd.f32 %v441_v15, %v427_v14 }
 0x166   :  { %895 = vmatpush3.bf16.xpose.msra.mxu1 %v894_v58 }
 0x16b   :  { %v979_v61 = vpop.eup %978 }
 0x16c   :  { %v586_v63 = vmul.f32 %v979_v61, %v581_v59 }
 0x16d   :  { %835 = vmatmul.mubr.msk.f32.vlgmr.msra.gmra.mrb[0].mxu1 %vm306_vm1, %v1085_v3  ;;  %v428_v3 = vmul.f32 %v653_v13, %v653_v13 }
 0x16e   :  { %v588_v4 = vsel %vm587_vm3, %v581_v59, %v586_v63 }
 0x16f   :  { %v443_v21 = vadd.f32 %v442_v18, %v428_v3  ;;  %v591_v8 = vsel %vm589_vm5, %v590_v5, %v588_v4 }
 0x171   :  { %v444_v25 = vadd.f32 %v443_v21, %v429_v20 }
 0x173   :  { %v445_v28 = vadd.f32 %v444_v25, %v430_v24 }
 0x175   :  { %v446_v32 = vadd.f32 %v445_v28, %v431_v27 }
 0x177   :  { %v447_v35 = vadd.f32 %v446_v32, %v432_v31 }
 0x179   :  { %v448_v39 = vadd.f32 %v447_v35, %v433_v34 }
 0x17b   :  { %v449_v42 = vadd.f32 %v448_v39, %v434_v38 }
 0x17d   :  { %v450_v46 = vadd.f32 %v449_v42, %v435_v41 }
 0x17f   :  { %v451_v49 = vadd.f32 %v450_v46, %v436_v45 }
 0x181   :  { %v452_v51 = vadd.f32 %v451_v49, %v437_v48 }
 0x183   :  { %v453_v52 = vadd.f32 %v452_v51, %v438_v50 }
 0x185   :  { %v454_v53 = vrot.slane %v453_v52, 4 }
 0x187   :  { %v455_v54 = vadd.f32 %v454_v53, %v453_v52 }
 0x189   :  { %v456_v55 = vrot.slane %v455_v54, 2 }
 0x18b   :  { %v457_v56 = vadd.f32 %v456_v55, %v455_v54 }
 0x18d   :  { %v458_v57 = vrot.slane %v457_v56, 1 }
 0x18f   :  { %v459_v58 = vadd.f32 %v458_v57, %v457_v56 }
 0x191   :  { %980 = vrsqrt.f32 %v459_v58  ;;  %vm462_vm2 = vcmp.eq.f32.partialorder %v459_v58, inf  ;;  %v465_v2 = vand.u32 2147483648, %v459_v58  ;;  %vm464_vm4 = vcmp.eq.f32.partialorder %v459_v58, 0.0 }
 0x19b   :  { %v981_v62 = vpop.eup %980 }
 0x19c   :  { %v461_v1 = vmul.f32 %v981_v62, %v459_v58 }
 0x19e   :  { %v463_v6 = vsel %vm462_vm2, %v459_v58, %v461_v1 }
 0x19f   :  { %v466_v7 = vsel %vm464_vm4, %v465_v2, %v463_v6 }
 0x1a0   :  { %v592_v9 = vmul.f32 %v591_v8, %v466_v7 }
 0x1a2   :  { %593 = vst [vmem:[#allocation8] sm:$0x1] %v592_v9 }
 0x1a3   :  { %1037 = shalt.err (!%p1034_p6)
}
 0x1a4   :  { %s1038_s15 = scalar_lea.hbm %s1177_s3, 16 }
 0x1a5   :  { %p1039_p7 = scmp.ne.s32.totalorder %s1177_s3, %s1038_s15  ;;  %p1042_p8 = scmp.lt.u32.totalorder %s1038_s15, %s1177_s3 }
 0x1a7   :  { %p1044_p9 = pnand %p1042_p8, %p1039_p7 }
 0x1a9   :  { %1047 = shalt.err (!%p1044_p9)
}
 0x1aa   :  { %613 = dma.vmem_to_hbm [thread:$0]  %s611_s10, 16, %s1177_s3, [#allocation9]   ;;  %v384_v10 = vld [vmem:[#allocation7] sm:$0x1] }
 0x1ab   :  { %s1087_s22 = smov [#allocation7]  }
 0x1ac   :  { %s600_s23 = sshll.u32 %s1087_s22, 4  ;;  %s601_s23 = int_to_ptr.vmem [resolvable:$true] %s600_s23 }
 0x1ad   :  { %s1048_s24 = scalar_lea.vmem %s601_s23, 16  ;;  %s1052_s25 = scalar_lea.vmem %s601_s23, 32 }
 0x1ae   :  { %p1049_p10 = scmp.ne.s32.totalorder %s601_s23, %s1048_s24  ;;  %p1053_p11 = scmp.lt.s32.totalorder %s601_s23, %s601_s23 }
 0x1af   :  { %p1054_p12 = scmp.lt.s32.totalorder %s1052_s25, %s1048_s24 }
 0x1b1   :  { %p1055_p13 = por %p1054_p12, %p1053_p11 }
 0x1b3   :  { %p1056_p0 = pnand %p1055_p13, %p1049_p10 }
 0x240   :  { %v375_v11 = vpop.f32.mrb[0].mxu1 }
 0x241   :  { %v385_v12 = vadd.f32 %v384_v10, %v375_v11  ;;  %v836_v0 = vpop.f32.mrb[1].mxu1 }
 0x243   :  { %386 = vst [vmem:[#allocation7] sm:$0x1] %v385_v12 }
 0x244   :  { %1059 = shalt.err (!%p1056_p0)
}
 0x245   :  { %s1060_s3 = scalar_lea.hbm %s1176_s2, 16 }
 0x246   :  { %p1061_p1 = scmp.ne.s32.totalorder %s1176_s2, %s1060_s3  ;;  %p1064_p2 = scmp.lt.u32.totalorder %s1060_s3, %s1176_s2 }
 0x248   :  { %p1066_p3 = pnand %p1064_p2, %p1061_p1 }
 0x24a   :  { %1069 = shalt.err (!%p1066_p3)
}
 0x24b   :  { %603 = dma.vmem_to_hbm [thread:$0]  %s601_s23, 16, %s1176_s2, [#allocation4]  }
 0x24c   :  { %1074 = dma.done.wait [#allocation4], 16  }
 0x24d   :  { %1075 = vsyncadd [#allocation4], 4294967280 }
 0x24e   :  { %1076 = dma.done.wait [#allocation9], 16  }
 0x24f   :  { %1077 = vsyncadd [#allocation9], 4294967280 }
 0x250   :  { %620 = vsyncpa [#allocation3], 1 }
 0x251   :  { %621 = vsyncpa [#allocation6], 1 }
 0x252   :  { %622 = vsyncpa [#allocation4], 1 }
 0x253   :  { %623 = vsyncpa [#allocation9], 1 }

</bundles_post_ra>
